<compile_context>
chip_gen: v7x
topology: tpu7x:2x2x1
jax: 0.10.0
libtpu: 0.0.40
codegen_flags: <defaults>
</compile_context>

<pallas_src>
import jax
import jax.numpy as jnp
from jax.experimental import pallas as pl
from jax.experimental.pallas import tpu as pltpu


def _round_up(x, m):
    return ((x + m - 1) // m) * m


def _itemsize(dt):
    return jnp.dtype(dt).itemsize


def _pick_tiles(n_dst, n_src, d, adj_dtype, feat_dtype):
    """Dtype-aware tile picker.

    bf16/int8 path uses big tiles (HBM-bound regime); the f32 edge-weighted
    path halves tm/tk so the double-buffered footprint stays well under the
    v7x 32 MiB scoped / 64 MiB physical VMEM.
    """
    f32_path = jnp.dtype(feat_dtype) == jnp.dtype(jnp.float32)
    if jnp.dtype(adj_dtype) == jnp.dtype(jnp.int8):
        tm_align = 32
    elif jnp.dtype(adj_dtype) == jnp.dtype(jnp.bfloat16):
        tm_align = 16
    else:
        tm_align = 8

    tm_cap = 256 if f32_path else 512
    tk_cap = 512 if f32_path else 1024

    tm = min(tm_cap, _round_up(n_dst, tm_align))
    d_p128 = _round_up(d, 128)
    # Single j tile whenever it fits: adjacency is the dominant HBM stream and
    # is re-read d_p/tn times.
    tn = d_p128 if d_p128 <= 1024 else 512
    tk = min(tk_cap, _round_up(n_src, 128))

    # v7x megacore: guarantee >= 2 tiles on the parallel (i, j) axes when the
    # problem is big enough, so both TensorCores get work. Prefer splitting tm
    # (doubles feat_src re-reads) over tn (would double adjacency re-reads).
    n_dst_p = _round_up(n_dst, tm)
    d_p = _round_up(d, tn)
    if (n_dst_p // tm) * (d_p // tn) < 2:
        half_tm = (tm // 2 // tm_align) * tm_align
        if half_tm >= tm_align and n_dst > half_tm:
            tm = half_tm
        elif tn >= 256 and d > tn // 2:
            tn = tn // 2
    return tm, tn, tk


def _sage_mean_kernel(adj_ref, feat_src_ref, deg_ref, out_ref, acc_ref):
    # adj:  (tm, tk) int8/f32      feat_src: (tk, tn) bf16/f32
    # deg:  (tm, 1)  f32           out: (tm, tn)      feat_dst dtype
    # acc:  (tm, tn) f32 scratch (persists across the k reduction axis)
    k = pl.program_id(2)

    @pl.when(k == 0)
    def _init():
        acc_ref[...] = jnp.zeros_like(acc_ref)

    # int8 (or f32) adjacency tile -> feat dtype on the VPU, then MXU matmul.
    adj = adj_ref[...].astype(feat_src_ref.dtype)
    acc_ref[...] += jnp.dot(
        adj, feat_src_ref[...], preferred_element_type=jnp.float32
    )

    @pl.when(k == pl.num_programs(2) - 1)
    def _finalize():
        deg = deg_ref[...]                                   # (tm, 1) f32
        inv = jnp.where(deg > 0.0, 1.0 / jnp.maximum(deg, 1.0), 0.0)
        out_ref[...] = (acc_ref[...] * inv).astype(out_ref.dtype)


def sage_mean_aggregate(adj, feat_src, deg, *, out_dtype, tm, tn, tk):
    """h_neigh = (adj @ feat_src) / max(deg, 1), zero where deg == 0.

    adj: (N_dst_p, N_src_p), feat_src: (N_src_p, D_p), deg: (N_dst_p, 1) f32.
    All padded dims must be multiples of the corresponding tile size.
    """
    n_dst, n_src = adj.shape
    n_src2, d = feat_src.shape
    assert n_src == n_src2
    assert n_dst % tm == 0 and n_src % tk == 0 and d % tn == 0

    grid = (n_dst // tm, d // tn, n_src // tk)
    i_tiles, j_tiles = grid[0], grid[1]

    out_bytes = _itemsize(out_dtype)
    bytes_accessed = (
        adj.size * adj.dtype.itemsize * j_tiles          # adj re-read per j tile
        + feat_src.size * feat_src.dtype.itemsize * i_tiles  # feat re-read per i tile
        + deg.size * deg.dtype.itemsize * j_tiles
        + n_dst * d * out_bytes
    )
    cost = pl.CostEstimate(
        flops=2 * n_dst * n_src * d,
        transcendentals=0,
        bytes_accessed=bytes_accessed,
    )

    # Double-buffered tiles + f32 accumulator scratch; set the scoped VMEM
    # limit explicitly (stays well under v7x's 64 MiB physical VMEM).
    vmem_bytes = (
        2 * tm * tk * adj.dtype.itemsize
        + 2 * tk * tn * feat_src.dtype.itemsize
        + 2 * tm * 1 * 4
        + 2 * tm * tn * out_bytes
        + tm * tn * 4
    )
    vmem_limit = min(32 << 20, max(int(vmem_bytes * 1.5), 16 << 20))

    return pl.pallas_call(
        _sage_mean_kernel,
        out_shape=jax.ShapeDtypeStruct((n_dst, d), out_dtype),
        grid_spec=pltpu.PrefetchScalarGridSpec(
            num_scalar_prefetch=0,
            grid=grid,
            in_specs=[
                pl.BlockSpec((tm, tk), lambda i, j, k: (i, k)),   # adj
                pl.BlockSpec((tk, tn), lambda i, j, k: (k, j)),   # feat_src
                pl.BlockSpec((tm, 1), lambda i, j, k: (i, 0)),    # deg
            ],
            out_specs=pl.BlockSpec((tm, tn), lambda i, j, k: (i, j)),
            scratch_shapes=[pltpu.VMEM((tm, tn), jnp.float32)],
        ),
        compiler_params=pltpu.CompilerParams(
            dimension_semantics=("parallel", "parallel", "arbitrary"),
            vmem_limit_bytes=vmem_limit,
        ),
        cost_estimate=cost,
    )(adj, feat_src, deg)


def one_dir_sage_conv(edges_src, edges_dst, feat_src, feat_dst,
                      edge_weight=None):
    """Pallas implementation of OneDirSAGEConv.forward (aggregator='mean',
    feat_drop=0.0 -> identity). Returns (h_self, h_neigh)."""
    n_src, d = feat_src.shape
    n_dst = feat_dst.shape[0]

    h_self = feat_dst  # no learned weights / bias in this module

    if edges_src.shape[0] == 0:
        return h_self, jnp.zeros((n_dst, d), dtype=feat_dst.dtype)

    weighted = edge_weight is not None
    # Unweighted: int8 0/1 adjacency (exact; note: multigraphs with >127
    # parallel edges between one (dst, src) pair would overflow) + bf16
    # features -> half the HBM bytes on the two big streams.
    # Weighted: keep f32 end to end.
    adj_dtype = jnp.float32 if weighted else jnp.int8
    feat_dtype = jnp.float32 if weighted else jnp.bfloat16
    out_dtype = feat_dst.dtype

    tm, tn, tk = _pick_tiles(n_dst, n_src, d, adj_dtype, feat_dtype)
    n_dst_p = _round_up(n_dst, tm)
    n_src_p = _round_up(n_src, tk)
    d_p = _round_up(d, tn)

    if weighted:
        w = edge_weight.reshape(-1).astype(adj_dtype)
    else:
        w = jnp.ones(edges_src.shape, dtype=adj_dtype)

    # ---- plain-JAX glue: edge list -> padded dense adjacency + in-degree ----
    # TODO(synk): CSR scalar-prefetch gather path for large sparse graphs
    # (this dense scatter-add + SpMM over-fetches heavily at GNN sparsity).
    adj = jnp.zeros((n_dst_p, n_src_p), dtype=adj_dtype)
    adj = adj.at[edges_dst, edges_src].add(w)
    deg = jnp.zeros((n_dst_p, 1), dtype=jnp.float32)
    deg = deg.at[edges_dst, 0].add(1.0)

    fs = jnp.zeros((n_src_p, d_p), dtype=feat_dtype)
    fs = fs.at[:n_src, :d].set(feat_src.astype(feat_dtype))

    h_neigh = sage_mean_aggregate(adj, fs, deg, out_dtype=out_dtype,
                                  tm=tm, tn=tn, tk=tk)
    h_neigh = h_neigh[:n_dst, :d]
    return h_self, h_neigh


if __name__ == "__main__":
    key = jax.random.PRNGKey(0)
    k1, k2, k3, k4, k5 = jax.random.split(key, 5)

    # Small synthetic unidirectional bipartite graph.
    n_src, n_dst, d_in = 32, 16, 32
    n_edges = 64

    feat_src = jax.random.normal(k1, (n_src, d_in), dtype=jnp.float32)
    feat_dst = jax.random.normal(k2, (n_dst, d_in), dtype=jnp.float32)
    edges_src = jax.random.randint(k3, (n_edges,), 0, n_src)
    edges_dst = jax.random.randint(k4, (n_edges,), 0, n_dst)

    # ---- unweighted path (int8 adjacency, bf16 features) ----
    h_self, h_neigh = one_dir_sage_conv(edges_src, edges_dst, feat_src, feat_dst)
    jax.block_until_ready((h_self, h_neigh))

    adj_ref = jnp.zeros((n_dst, n_src), jnp.float32).at[edges_dst, edges_src].add(1.0)
    deg_ref = jnp.zeros((n_dst,), jnp.float32).at[edges_dst].add(1.0)
    ref = (adj_ref @ feat_src) / jnp.maximum(deg_ref, 1.0)[:, None]
    ref = jnp.where(deg_ref[:, None] > 0, ref, 0.0)
    assert jnp.allclose(h_neigh, ref, atol=3e-2, rtol=3e-2), "unweighted mismatch"
    assert jnp.allclose(h_self, feat_dst), "h_self must be identity of feat_dst"

    # ---- edge-weighted path (f32 operands) ----
    ew = jax.random.uniform(k5, (n_edges,), dtype=jnp.float32, minval=0.5, maxval=1.5)
    _, h_neigh_w = one_dir_sage_conv(edges_src, edges_dst, feat_src, feat_dst,
                                     edge_weight=ew)
    jax.block_until_ready(h_neigh_w)
    adj_w = jnp.zeros((n_dst, n_src), jnp.float32).at[edges_dst, edges_src].add(ew)
    ref_w = (adj_w @ feat_src) / jnp.maximum(deg_ref, 1.0)[:, None]
    ref_w = jnp.where(deg_ref[:, None] > 0, ref_w, 0.0)
    assert jnp.allclose(h_neigh_w, ref_w, atol=2e-3, rtol=2e-3), "weighted mismatch"

    print("KERNEL_OK")
</pallas_src>

<mosaic_0001>
module attributes {stable_mosaic.version = 11 : i64} {
  func.func @_sage_mean_kernel(%arg0: i32, %arg1: i32, %arg2: i32, %arg3: memref<32x128xi8, #tpu.memory_space<vmem>>, %arg4: memref<128x128xbf16, #tpu.memory_space<vmem>>, %arg5: memref<32x1xf32, #tpu.memory_space<vmem>>, %arg6: memref<32x128xf32, #tpu.memory_space<vmem>>, %arg7: memref<32x128xf32, #tpu.memory_space<vmem>>) attributes {dimension_semantics = [#tpu.dimension_semantics<parallel>, #tpu.dimension_semantics<parallel>, #tpu.dimension_semantics<arbitrary>], iteration_bounds = array<i64: 1, 1, 1>, scalar_prefetch = 0 : i64, scratch_operands = 1 : i64, tpu.core_type = #tpu.core_type<tc>, window_params = [{transform_indices = @transform_0, window_bounds = array<i64: 32, 128>}, {transform_indices = @transform_1, window_bounds = array<i64: 128, 128>}, {transform_indices = @transform_2, window_bounds = array<i64: 32, 1>}, {transform_indices = @transform_3, window_bounds = array<i64: 32, 128>}]} {
    %c0_i32 = arith.constant 0 : i32
    %0 = arith.cmpi eq, %arg2, %c0_i32 : i32
    %1 = arith.extui %0 : i1 to i32
    %c0_i32_0 = arith.constant 0 : i32
    %2 = arith.cmpi ne, %1, %c0_i32_0 : i32
    scf.if %2 {
      %cst_10 = arith.constant 0.000000e+00 : f32
      %13 = vector.broadcast %cst_10 : f32 to vector<32x128xf32>
      %c0_11 = arith.constant 0 : index
      %c0_12 = arith.constant 0 : index
      %14 = vector.load %arg7[%c0_11, %c0_12] : memref<32x128xf32, #tpu.memory_space<vmem>>, vector<32x128xf32>
      tpu.vector_store %arg7[%c0_11, %c0_12], %13 {strides = array<i32>} : memref<32x128xf32, #tpu.memory_space<vmem>>, vector<32x128xf32>,
    } else {
    }
    %c0 = arith.constant 0 : index
    %c0_1 = arith.constant 0 : index
    %3 = vector.load %arg3[%c0, %c0_1] : memref<32x128xi8, #tpu.memory_space<vmem>>, vector<32x128xi8>
    %4 = arith.sitofp %3 : vector<32x128xi8> to vector<32x128xbf16>
    %c0_2 = arith.constant 0 : index
    %c0_3 = arith.constant 0 : index
    %5 = vector.load %arg7[%c0_2, %c0_3] : memref<32x128xf32, #tpu.memory_space<vmem>>, vector<32x128xf32>
    %c0_4 = arith.constant 0 : index
    %c0_5 = arith.constant 0 : index
    %6 = vector.load %arg4[%c0_4, %c0_5] : memref<128x128xbf16, #tpu.memory_space<vmem>>, vector<128x128xbf16>
    %cst = arith.constant dense<0.000000e+00> : vector<32x128xf32>
    %7 = tpu.matmul %4, %6, %cst {dimension_numbers = #tpu.dot_dimension_numbers<[1], [0], [0], [1], [0, 0, 1, 1], [], []>} : vector<32x128xbf16>, vector<128x128xbf16>, vector<32x128xf32> -> vector<32x128xf32>
    %8 = arith.addf %5, %7 : vector<32x128xf32>
    %c0_6 = arith.constant 0 : index
    %c0_7 = arith.constant 0 : index
    %9 = vector.load %arg7[%c0_6, %c0_7] : memref<32x128xf32, #tpu.memory_space<vmem>>, vector<32x128xf32>
    tpu.vector_store %arg7[%c0_6, %c0_7], %8 {strides = array<i32>} : memref<32x128xf32, #tpu.memory_space<vmem>>, vector<32x128xf32>,
    %c0_i32_8 = arith.constant 0 : i32
    %10 = arith.cmpi eq, %arg2, %c0_i32_8 : i32
    %11 = arith.extui %10 : i1 to i32
    %c0_i32_9 = arith.constant 0 : i32
    %12 = arith.cmpi ne, %11, %c0_i32_9 : i32
    scf.if %12 {
      %c0_10 = arith.constant 0 : index
      %c0_11 = arith.constant 0 : index
      %13 = vector.load %arg5[%c0_10, %c0_11] : memref<32x1xf32, #tpu.memory_space<vmem>>, vector<32x1xf32>
      %cst_12 = arith.constant 0.000000e+00 : f32
      %14 = vector.broadcast %cst_12 : f32 to vector<32x1xf32>
      %15 = arith.cmpf ogt, %13, %14 : vector<32x1xf32>
      %cst_13 = arith.constant 1.000000e+00 : f32
      %16 = vector.broadcast %cst_13 : f32 to vector<32x1xf32>
      %17 = arith.maximumf %13, %16 : vector<32x1xf32>
      %cst_14 = arith.constant 1.000000e+00 : f32
      %18 = vector.broadcast %cst_14 : f32 to vector<32x1xf32>
      %19 = arith.divf %18, %17 : vector<32x1xf32>
      %cst_15 = arith.constant 0.000000e+00 : f32
      %20 = vector.broadcast %cst_15 : f32 to vector<32x1xf32>
      %21 = arith.select %15, %19, %20 : vector<32x1xi1>, vector<32x1xf32>
      %c0_16 = arith.constant 0 : index
      %c0_17 = arith.constant 0 : index
      %22 = vector.load %arg7[%c0_16, %c0_17] : memref<32x128xf32, #tpu.memory_space<vmem>>, vector<32x128xf32>
      %23 = vector.broadcast %21 : vector<32x1xf32> to vector<32x128xf32>
      %24 = arith.mulf %22, %23 : vector<32x128xf32>
      %c0_18 = arith.constant 0 : index
      %c0_19 = arith.constant 0 : index
      %25 = vector.load %arg6[%c0_18, %c0_19] : memref<32x128xf32, #tpu.memory_space<vmem>>, vector<32x128xf32>
      tpu.vector_store %arg6[%c0_18, %c0_19], %24 {strides = array<i32>} : memref<32x128xf32, #tpu.memory_space<vmem>>, vector<32x128xf32>,
    } else {
    }
    return
  }
  func.func @transform_0(%arg0: i32, %arg1: i32, %arg2: i32) -> (i32, i32) {
    %c0_i32 = arith.constant 0 : i32
    return %arg0, %arg2 : i32, i32
  }
  func.func @transform_1(%arg0: i32, %arg1: i32, %arg2: i32) -> (i32, i32) {
    %c0_i32 = arith.constant 0 : i32
    return %arg2, %arg1 : i32, i32
  }
  func.func @transform_2(%arg0: i32, %arg1: i32, %arg2: i32) -> (i32, i32) {
    %c0_i32 = arith.constant 0 : i32
    %c0_i32_0 = arith.constant 0 : i32
    return %arg0, %c0_i32 : i32, i32
  }
  func.func @transform_3(%arg0: i32, %arg1: i32, %arg2: i32) -> (i32, i32) {
    %c0_i32 = arith.constant 0 : i32
    return %arg0, %arg1 : i32, i32
  }
}

</mosaic_0001>

<bundles_post_ra>
// kernel: tpu_custom_call.1
= control target key start
LH: loop header
LB: loop body
LE: loop exit
PB: predicated region body
PF: predicated region fallthrough
CT: control target
= control target key end

     0   :  { %8 = vsyncpa [#allocation4], 0  ;;  %s419_s0 = inlined_call_operand.vmem [shape: s8[32,128], index: 0, kind: input, shape index: {}]   ;;  %s420_s1 = inlined_call_operand.hbm [shape: bf16[128,128], index: 1, kind: input, shape index: {}]   ;;  %s421_s2 = inlined_call_operand.vmem [shape: f32[32,1], index: 2, kind: input, shape index: {}]   ;;  %s422_s3 = inlined_call_operand.hbm [shape: f32[32,128], index: 3, kind: output, shape index: {}]  }
   0x1   :  { %9 = vsyncpa [#allocation5], 0  ;;  %s353_s12 = smov [#allocation3]   ;;  %s305_s16 = scalar_lea.hbm %s420_s1, 1024 }
   0x2   :  { %s17_s13 = sshll.u32 %s353_s12, 4  ;;  %p306_p0 = scmp.ne.s32.totalorder %s420_s1, %s305_s16  ;;  %s18_s13 = int_to_ptr.vmem [resolvable:$true] %s17_s13 }
   0x3   :  { %p309_p1 = scmp.lt.u32.totalorder %s305_s16, %s420_s1 }
   0x5   :  { %p311_p2 = pnand %p309_p1, %p306_p0 }
   0x7   :  { %314 = shalt.err (!%p311_p2)
}
   0x8   :  { %s315_s21 = scalar_lea.vmem %s18_s13, 1024  ;;  %p320_p4 = scmp.lt.s32.totalorder %s18_s13, %s18_s13 }
   0x9   :  { %p316_p3 = scmp.ne.s32.totalorder %s18_s13, %s315_s21  ;;  %p321_p5 = scmp.lt.s32.totalorder %s315_s21, %s315_s21 }
   0xb   :  { %p322_p6 = por %p321_p5, %p320_p4 }
   0xd   :  { %p323_p7 = pnand %p322_p6, %p316_p3 }
   0xf   :  { %326 = shalt.err (!%p323_p7)
}
  0x10   :  { %s354_s22 = smov 64   ;;  %s355_s23 = smov 4  }
  0x11   :  { %23 = dma.hbm_to_vmem [thread:$0]  %s420_s1, 1024, %s18_s13, [#allocation4], %s354_s22, %s354_s22, %s355_s23  }
  0x12   :  { %349 = dma.done.wait [#allocation4], 1024  }
  0x13   :  { %350 = vsyncadd [#allocation4], 4294966272  ;;  %v356_v0 = vmov 0   ;;  %v289_v1 = vld [vmem:[#allocation3] sm:$0xff]   ;;  %v290_v2 = vld [vmem:[#allocation3 + $0x8] sm:$0xff]  }
  0x14   :  { %288 = vset.pattern.permute.xlu1 %v356_v0  ;;  %287 = vset.pattern.permute.xlu0 %v356_v0  ;;  %v291_v3 = vld [vmem:[#allocation3 + $0x10] sm:$0xff]   ;;  %v292_v4 = vld [vmem:[#allocation3 + $0x18] sm:$0xff]   ;;  %v38_v5 = vld [vmem:[%s419_s0] sm:$0xff]  ;;  %s357_s0 = smov [#allocation6]  }
  0x15   :  { %260 = vmatprep.subr.bf16.mxu0 %v289_v1  ;;  %v171_v6 = vld [vmem:[%s421_s2 + $0x10] sm:$0xff]  ;;  %v169_v7 = vld [vmem:[%s421_s2] sm:$0xff]  ;;  %v39_v8 = vunpack.c.l.s8.bf16 %v38_v5  ;;  %v172_v10 = vld [vmem:[%s421_s2 + $0x18] sm:$0xff]  ;;  %v40_v27 = vunpack.c.h.s8.bf16 %v38_v5 }
  0x16   :  { %261 = vmatpush3.bf16.msra.mxu0 %v289_v1  ;;  %v179_v9 = vmax.f32 %v171_v6, 1.0  ;;  %v170_v11 = vld [vmem:[%s421_s2 + $0x8] sm:$0xff]  ;;  %v177_v12 = vmax.f32 %v169_v7, 1.0  ;;  %v180_v13 = vmax.f32 %v172_v10, 1.0  ;;  %v293_v15 = vld [vmem:[#allocation3 + $0x20] sm:$0xff]   ;;  %vm175_vm0 = vcmp.gt.f32.partialorder %v171_v6, 0.0 }
  0x17   :  { %262 = vmatprep.subr.bf16.mxu0 %v290_v2  ;;  %276 = vmatprep.mubr.bf16.mxu0 %v39_v8  ;;  %v178_v14 = vmax.f32 %v170_v11, 1.0  ;;  %v294_v16 = vld [vmem:[#allocation3 + $0x28] sm:$0xff]   ;;  %v295_v17 = vld [vmem:[#allocation3 + $0x30] sm:$0xff]   ;;  %vm173_vm1 = vcmp.gt.f32.partialorder %v169_v7, 0.0  ;;  %vm176_vm2 = vcmp.gt.f32.partialorder %v172_v10, 0.0  ;;  %vm174_vm3 = vcmp.gt.f32.partialorder %v170_v11, 0.0 }
  0x18   :  { %297 = vrcp.f32 %v179_v9  ;;  %v296_v24 = vld [vmem:[#allocation3 + $0x38] sm:$0xff]   ;;  %s230_s2 = sshll.u32 %s357_s0, 4  ;;  %s231_s2 = int_to_ptr.vmem [resolvable:$true] %s230_s2 }
  0x19   :  { %299 = vrcp.f32 %v177_v12  ;;  %s327_s8 = scalar_lea.vmem %s231_s2, 512  ;;  %p332_p9 = scmp.lt.s32.totalorder %s231_s2, %s231_s2 }
  0x1a   :  { %263 = vmatpush3.bf16.msra.mxu0 %v290_v2  ;;  %301 = vrcp.f32 %v180_v13  ;;  %p328_p8 = scmp.ne.s32.totalorder %s231_s2, %s327_s8  ;;  %p333_p10 = scmp.lt.s32.totalorder %s327_s8, %s327_s8 }
  0x1b   :  { %264 = vmatprep.subr.bf16.mxu0 %v291_v3  ;;  %303 = vrcp.f32 %v178_v14 }
  0x1c   :  { %p334_p11 = por %p333_p10, %p332_p9 }
  0x1e   :  { %265 = vmatpush3.bf16.msra.mxu0 %v291_v3  ;;  %p335_p12 = pnand %p334_p11, %p328_p8 }
  0x1f   :  { %266 = vmatprep.subr.bf16.mxu0 %v292_v4 }
  0x22   :  { %267 = vmatpush3.bf16.msra.mxu0 %v292_v4  ;;  %v298_v18 = vpop.eup %297 }
  0x23   :  { %268 = vmatprep.subr.bf16.mxu0 %v293_v15  ;;  %v300_v19 = vpop.eup %299  ;;  %v191_v20 = vsel %vm175_vm0, %v298_v18, 0.0 }
  0x24   :  { %v302_v21 = vpop.eup %301  ;;  %209 = vperm.xlu1 %288, %v191_v20   ;;  %v189_v22 = vsel %vm173_vm1, %v300_v19, 0.0 }
  0x25   :  { %v304_v23 = vpop.eup %303  ;;  %199 = vperm.xlu0 %287, %v189_v22   ;;  %v192_v25 = vsel %vm176_vm2, %v302_v21, 0.0 }
  0x26   :  { %269 = vmatpush3.bf16.msra.mxu0 %v293_v15  ;;  %v190_v26 = vsel %vm174_vm3, %v304_v23, 0.0 }
  0x27   :  { %270 = vmatprep.subr.bf16.mxu0 %v294_v16 }
  0x28   :  { %214 = vperm.xlu1 %288, %v192_v25  }
  0x29   :  { %204 = vperm.xlu0 %287, %v190_v26  }
  0x2a   :  { %271 = vmatpush3.bf16.msra.mxu0 %v294_v16 }
  0x2b   :  { %272 = vmatprep.subr.bf16.mxu0 %v295_v17 }
  0x2e   :  { %273 = vmatpush3.bf16.msra.mxu0 %v295_v17 }
  0x2f   :  { %274 = vmatprep.subr.bf16.mxu0 %v296_v24 }
  0x32   :  { %275 = vmatpush3.bf16.msra.mxu0 %v296_v24 }
  0x35   :  { %277 = vmatmul.mubr.bf16.vlgmr.msra.gmra.mrb[0].mxu0 %v40_v27 }
  0xa3   :  { %v210_v28 = vpop.permute.xlu1 %209 }
  0xa4   :  { %v200_v29 = vpop.permute.xlu0 %199 }
  0xa7   :  { %v215_v33 = vpop.permute.xlu1 %214 }
  0xa8   :  { %v205_v36 = vpop.permute.xlu0 %204 }
 0x108   :  { %v278_v30 = vpop.f32.mrb[0].mxu0 }
 0x109   :  { %v219_v31 = vmul.f32 %v278_v30, %v210_v28  ;;  %v143_v32 = vpop.f32.mrb[1].mxu0 }
 0x10a   :  { %v217_v34 = vmul.f32 %v200_v29, %v143_v32  ;;  %v279_v35 = vpop.f32.mrb[2].mxu0 }
 0x10b   :  { %223 = vst [vmem:[#allocation6 + $0x10] sm:$0xff] %v219_v31  ;;  %v220_v37 = vmul.f32 %v279_v35, %v215_v33  ;;  %v146_v38 = vpop.f32.mrb[3].mxu0 }
 0x10c   :  { %221 = vst [vmem:[#allocation6] sm:$0xff] %v217_v34  ;;  %v218_v39 = vmul.f32 %v205_v36, %v146_v38 }
 0x10d   :  { %224 = vst [vmem:[#allocation6 + $0x18] sm:$0xff] %v220_v37 }
 0x10e   :  { %222 = vst [vmem:[#allocation6 + $0x8] sm:$0xff] %v218_v39 }
 0x10f   :  { %338 = shalt.err (!%p335_p12)
}
 0x110   :  { %s339_s11 = scalar_lea.hbm %s422_s3, 512 }
 0x111   :  { %p340_p13 = scmp.ne.s32.totalorder %s422_s3, %s339_s11  ;;  %p343_p0 = scmp.lt.u32.totalorder %s339_s11, %s422_s3 }
 0x113   :  { %p345_p1 = pnand %p343_p0, %p340_p13 }
 0x115   :  { %348 = shalt.err (!%p345_p1)
}
 0x116   :  { %s358_s16 = smov 128   ;;  %s359_s17 = smov 8  }
 0x117   :  { %236 = dma.vmem_to_hbm [thread:$0]  %s231_s2, 512, %s422_s3, [#allocation5], %s358_s16, %s358_s16, %s359_s17  }
 0x118   :  { %351 = dma.done.wait [#allocation5], 512  }
 0x119   :  { %352 = vsyncadd [#allocation5], 4294966784 }
 0x11a   :  { %240 = vsyncpa [#allocation4], 1 }
 0x11b   :  { %241 = vsyncpa [#allocation5], 1 }

</bundles_post_ra>
